<compile_context>
chip_gen: v5e
topology: v5e:2x2
jax: 0.10.0
libtpu: 0.0.40
codegen_flags: <defaults>
</compile_context>

<pallas_src>
import functools
import math

import jax
import jax.numpy as jnp
from jax.experimental import pallas as pl
from jax.experimental.pallas import tpu as pltpu


def _round_up(x: int, m: int) -> int:
    return (x + m - 1) // m * m


def _choose_batch_tile(B: int, S: int, P: int) -> int:
    """Batch elements per grid step.

    Aims: (a) Bt*S >= 256 rows so the packed projection fills the MXU M dim
    (256-row systolic array on v6e/v7x, 128 on v5e); (b) >= 2 grid steps when
    the batch allows it so both v7x TensorCores get work; (c) bounded VMEM for
    the [Bt, S, S] logits and [Bt*S, P] projection (v7x: 64 MiB physical).
    """
    if S % 8 != 0:
        # Keep the in-kernel [Bt, S, D] -> [Bt*S, D] collapse tile-aligned.
        return 1
    vmem_cap = 4 << 20  # bytes per f32 intermediate, conservative
    divisors = [d for d in range(1, B + 1) if B % d == 0]
    # Prefer >= 2 grid steps (v7x has 2 TensorCores) when B >= 2.
    cands = [d for d in divisors if d <= max(1, B // 2)] or divisors
    cands = [d for d in cands
             if 4 * d * S * S <= vmem_cap and 4 * d * S * P <= vmem_cap] or [cands[0]]
    for d in cands:
        if d * S >= 256:
            return d
    return cands[-1]


def _attn_kernel(seq_ref, w_ref, b_ref, out_ref, *, vp, kp):
    bt, s_len, d = seq_ref.shape

    # [Bt, S, D] -> [Bt*S, D]: leading-dim collapse (S is a sublane multiple or
    # Bt == 1), so no relayout; one MXU push covers all Bt*S projection rows.
    x = seq_ref[...].reshape(bt * s_len, d).astype(jnp.bfloat16)
    w = w_ref[...]                      # [D, P] bf16, packed (V | Q*scale | K)
    bias = b_ref[...]                   # [1, P] f32

    # Single packed projection for the whole block, f32 accumulation.
    proj = jnp.dot(x, w, preferred_element_type=jnp.float32) + bias   # [Bt*S, P]
    proj = proj.reshape(bt, s_len, -1)                                # [Bt, S, P]

    # 128-lane-aligned segments; zero-padded columns contribute exactly 0.
    value = proj[:, :, 0:vp].astype(jnp.bfloat16)                # [Bt, S, Vp]
    query = proj[:, :, vp:2 * vp].astype(jnp.bfloat16)           # [Bt, S, Vp] (scaled)
    keys = proj[:, :, 2 * vp:2 * vp + kp].astype(jnp.bfloat16)   # [Bt, S, Kp]

    # logits[b, s, t] = value[b, s] . query[b, t]  (1/sqrt(D) folded into query)
    logits = jnp.einsum('bsv,btv->bst', value, query,
                        preferred_element_type=jnp.float32)      # [Bt, S, S] f32

    # Numerically stable softmax numerator; normalization deferred below.
    m = jnp.max(logits, axis=-1, keepdims=True)
    e = jnp.exp(logits - m)
    denom = jnp.sum(e, axis=-1, keepdims=True)                   # [Bt, S, 1]

    # Unnormalized PV matmul, then an O(S*Kp) scale instead of an O(S^2) one.
    out = jnp.einsum('bst,btk->bsk', e.astype(jnp.bfloat16), keys,
                     preferred_element_type=jnp.float32)         # [Bt, S, Kp]
    out = out * pl.reciprocal(denom, approx=True)                # EUP slot

    # Lane-dense store: full Kp (=128-padded) columns, unmasked vst.
    out_ref[...] = out.astype(out_ref.dtype)


def transformer_attn_forward(seq, wv, bv, wq, bq, wk, bk):
    """seq: [S, B, D] -> [S, B, K], same semantics as TransformerAttn.forward."""
    S, B, D = seq.shape
    V = wv.shape[1]
    K = wk.shape[1]
    assert wq.shape[1] == V, "query and value transforms must share output dim"

    scale = 1.0 / math.sqrt(D)  # PyTorch divides by sqrt(seq.shape[-1]) == sqrt(D)

    # Pack Wv | Wq*scale | Wk into one weight, each segment padded to a 128-lane
    # boundary, pre-cast to bf16.  In a real model this happens once at
    # parameter-load time, not per forward.
    Vp = _round_up(V, 128)
    Kp = _round_up(K, 128)
    P = 2 * Vp + Kp

    w_packed = jnp.zeros((D, P), jnp.float32)
    w_packed = w_packed.at[:, 0:V].set(wv)
    w_packed = w_packed.at[:, Vp:Vp + V].set(wq * scale)
    w_packed = w_packed.at[:, 2 * Vp:2 * Vp + K].set(wk)
    w_packed = w_packed.astype(jnp.bfloat16)

    b_packed = jnp.zeros((1, P), jnp.float32)
    b_packed = b_packed.at[0, 0:V].set(bv)
    b_packed = b_packed.at[0, Vp:Vp + V].set(bq * scale)
    b_packed = b_packed.at[0, 2 * Vp:2 * Vp + K].set(bk)

    Bt = _choose_batch_tile(B, S, P)
    grid = (B // Bt,)

    # Single HBM relayout so each block's last-two dims are the tile-friendly
    # (S, D) and Bt is a free leading dim (see NOTE/TODO at the top of file).
    seq_bsd = jnp.transpose(seq, (1, 0, 2))          # [B, S, D]

    kernel = functools.partial(_attn_kernel, vp=Vp, kp=Kp)

    out_padded = pl.pallas_call(
        kernel,
        out_shape=jax.ShapeDtypeStruct((B, S, Kp), seq.dtype),
        grid_spec=pltpu.PrefetchScalarGridSpec(
            num_scalar_prefetch=0,
            grid=grid,   # batch groups; "parallel" -> split across v7x's 2 TCs
            in_specs=[
                pl.BlockSpec((Bt, S, D), lambda g: (g, 0, 0)),   # activations
                # Packed weights/bias are constant across the grid; at these
                # sizes (D*P bf16 ~ tens of KiB) double-buffering is harmless.
                # For large D*P on v7x (64 MiB VMEM), single-buffer them via
                # pipeline_mode=pl.Buffered(1) or a run_scoped one-time copy.
                pl.BlockSpec((D, P), lambda g: (0, 0)),
                pl.BlockSpec((1, P), lambda g: (0, 0)),
            ],
            out_specs=pl.BlockSpec((Bt, S, Kp), lambda g: (g, 0, 0)),
        ),
        compiler_params=pltpu.CompilerParams(
            dimension_semantics=("parallel",),
        ),
    )(seq_bsd, w_packed, b_packed)

    # TODO(synk): for S beyond ~1k add a key/value tile axis ("arbitrary") with
    # flash-style online-softmax accumulators so the [Bt, S, S] logits stay
    # bounded in VMEM (v7x has 64 MiB physical / 32 MiB scoped default).

    # Lane-dense [B, S, Kp] kernel output; the transpose back to [S, B, *] is
    # fused by XLA with the mandatory Kp -> K depad slice into one copy.
    return jnp.transpose(out_padded, (1, 0, 2))[:, :, :K]     # [S, B, K]


def _reference(seq, wv, bv, wq, bq, wk, bk):
    """Pure-JAX f32 reference mirroring the PyTorch forward."""
    seq_in = jnp.transpose(seq, (1, 0, 2))
    value = seq_in @ wv + bv
    query = seq_in @ wq + bq
    keys = seq_in @ wk + bk
    weights = jnp.einsum("bsv,btv->bst", value, query) / math.sqrt(seq.shape[-1])
    weights = jax.nn.softmax(weights, axis=-1)
    return jnp.transpose(jnp.einsum("bst,btk->bsk", weights, keys), (1, 0, 2))


if __name__ == "__main__":
    # Small shapes consistent with the module: seq_len=8, batch=2, hidden=32,
    # value_dim=key_dim=32.
    S, B, D = 8, 2, 32
    V, K = 32, 32

    key = jax.random.PRNGKey(0)
    k_seq, k_wv, k_bv, k_wq, k_bq, k_wk, k_bk = jax.random.split(key, 7)

    bound = 1.0 / math.sqrt(D)  # nn.Linear-style uniform init
    seq = jax.random.normal(k_seq, (S, B, D), dtype=jnp.float32)
    wv = jax.random.uniform(k_wv, (D, V), minval=-bound, maxval=bound, dtype=jnp.float32)
    bv = jax.random.uniform(k_bv, (V,), minval=-bound, maxval=bound, dtype=jnp.float32)
    wq = jax.random.uniform(k_wq, (D, V), minval=-bound, maxval=bound, dtype=jnp.float32)
    bq = jax.random.uniform(k_bq, (V,), minval=-bound, maxval=bound, dtype=jnp.float32)
    wk = jax.random.uniform(k_wk, (D, K), minval=-bound, maxval=bound, dtype=jnp.float32)
    bk = jax.random.uniform(k_bk, (K,), minval=-bound, maxval=bound, dtype=jnp.float32)

    out = transformer_attn_forward(seq, wv, bv, wq, bq, wk, bk)
    out = jax.block_until_ready(out)

    ref = _reference(seq, wv, bv, wq, bq, wk, bk)
    assert out.shape == (S, B, K), out.shape
    # bf16 MXU inputs + approx reciprocal -> loosened tolerance vs f32 reference.
    assert jnp.allclose(out, ref, atol=2e-2, rtol=2e-2), "mismatch vs reference"

    print("KERNEL_OK")
</pallas_src>

<mosaic_0001>
module attributes {stable_mosaic.version = 11 : i64} {
  func.func @_attn_kernel(%arg0: i32, %arg1: memref<1x8x32xf32, #tpu.memory_space<vmem>>, %arg2: memref<32x384xbf16, #tpu.memory_space<vmem>>, %arg3: memref<1x384xf32, #tpu.memory_space<vmem>>, %arg4: memref<1x8x128xf32, #tpu.memory_space<vmem>>) attributes {dimension_semantics = [#tpu.dimension_semantics<parallel>], iteration_bounds = array<i64: 2>, scalar_prefetch = 0 : i64, scratch_operands = 0 : i64, tpu.core_type = #tpu.core_type<tc>, window_params = [{transform_indices = @transform_0, window_bounds = array<i64: 1, 8, 32>}, {pipeline_mode = #tpu.pipeline_mode<synchronous>, transform_indices = @transform_1, window_bounds = array<i64: 32, 384>}, {pipeline_mode = #tpu.pipeline_mode<synchronous>, transform_indices = @transform_2, window_bounds = array<i64: 1, 384>}, {transform_indices = @transform_3, window_bounds = array<i64: 1, 8, 128>}]} {
    %c0 = arith.constant 0 : index
    %c0_0 = arith.constant 0 : index
    %c0_1 = arith.constant 0 : index
    %0 = vector.load %arg1[%c0, %c0_0, %c0_1] : memref<1x8x32xf32, #tpu.memory_space<vmem>>, vector<1x8x32xf32>
    %1 = vector.shape_cast %0 : vector<1x8x32xf32> to vector<8x32xf32>
    %2 = arith.truncf %1 : vector<8x32xf32> to vector<8x32xbf16>
    %c0_2 = arith.constant 0 : index
    %c0_3 = arith.constant 0 : index
    %3 = vector.load %arg2[%c0_2, %c0_3] : memref<32x384xbf16, #tpu.memory_space<vmem>>, vector<32x384xbf16>
    %c0_4 = arith.constant 0 : index
    %c0_5 = arith.constant 0 : index
    %4 = vector.load %arg3[%c0_4, %c0_5] : memref<1x384xf32, #tpu.memory_space<vmem>>, vector<1x384xf32>
    %cst = arith.constant dense<0.000000e+00> : vector<8x384xf32>
    %5 = tpu.matmul %2, %3, %cst {dimension_numbers = #tpu.dot_dimension_numbers<[1], [0], [0], [1], [0, 0, 1, 1], [], []>} : vector<8x32xbf16>, vector<32x384xbf16>, vector<8x384xf32> -> vector<8x384xf32>
    %6 = vector.broadcast %4 : vector<1x384xf32> to vector<8x384xf32>
    %7 = arith.addf %5, %6 : vector<8x384xf32>
    %8 = vector.shape_cast %7 : vector<8x384xf32> to vector<1x8x384xf32>
    %9 = vector.extract_strided_slice %8 {offsets = [0, 0, 0], sizes = [1, 8, 128], strides = [1, 1, 1]} : vector<1x8x384xf32> to vector<1x8x128xf32>
    %10 = arith.truncf %9 : vector<1x8x128xf32> to vector<1x8x128xbf16>
    %11 = vector.extract_strided_slice %8 {offsets = [0, 0, 128], sizes = [1, 8, 128], strides = [1, 1, 1]} : vector<1x8x384xf32> to vector<1x8x128xf32>
    %12 = arith.truncf %11 : vector<1x8x128xf32> to vector<1x8x128xbf16>
    %13 = vector.extract_strided_slice %8 {offsets = [0, 0, 256], sizes = [1, 8, 128], strides = [1, 1, 1]} : vector<1x8x384xf32> to vector<1x8x128xf32>
    %14 = arith.truncf %13 : vector<1x8x128xf32> to vector<1x8x128xbf16>
    "tpu.trace_start"() <{level = 10 : i32, message = "bsv,btv->bst"}> : () -> ()
    %cst_6 = arith.constant dense<0.000000e+00> : vector<1x8x8xf32>
    %15 = tpu.matmul %10, %12, %cst_6 {dimension_numbers = #tpu.dot_dimension_numbers<[2], [2], [1], [1], [0, 0, 0, 1, 1, 1], [0], [0]>} : vector<1x8x128xbf16>, vector<1x8x128xbf16>, vector<1x8x8xf32> -> vector<1x8x8xf32>
    "tpu.trace_stop"() : () -> ()
    %cst_7 = arith.constant dense<0xFF800000> : vector<1x8xf32>
    %16 = vector.multi_reduction <maximumf>, %15, %cst_7 [2] : vector<1x8x8xf32> to vector<1x8xf32>
    %17 = vector.shape_cast %16 : vector<1x8xf32> to vector<1x8x1xf32>
    %18 = vector.broadcast %17 : vector<1x8x1xf32> to vector<1x8x8xf32>
    %19 = arith.subf %15, %18 : vector<1x8x8xf32>
    %20 = math.exp %19 : vector<1x8x8xf32>
    %cst_8 = arith.constant dense<0.000000e+00> : vector<1x8xf32>
    %21 = vector.multi_reduction <add>, %20, %cst_8 [2] : vector<1x8x8xf32> to vector<1x8xf32>
    %22 = vector.shape_cast %21 : vector<1x8xf32> to vector<1x8x1xf32>
    %23 = arith.truncf %20 : vector<1x8x8xf32> to vector<1x8x8xbf16>
    "tpu.trace_start"() <{level = 10 : i32, message = "bst,btk->bsk"}> : () -> ()
    %cst_9 = arith.constant dense<0.000000e+00> : vector<1x8x128xf32>
    %24 = tpu.matmul %23, %14, %cst_9 {dimension_numbers = #tpu.dot_dimension_numbers<[2], [1], [1], [2], [0, 0, 0, 1, 1, 2], [0], [0]>} : vector<1x8x8xbf16>, vector<1x8x128xbf16>, vector<1x8x128xf32> -> vector<1x8x128xf32>
    "tpu.trace_stop"() : () -> ()
    %25 = tpu.reciprocal %22 {approx = true} : vector<1x8x1xf32> -> vector<1x8x1xf32>
    %26 = vector.broadcast %25 : vector<1x8x1xf32> to vector<1x8x128xf32>
    %27 = arith.mulf %24, %26 : vector<1x8x128xf32>
    %c0_10 = arith.constant 0 : index
    %c0_11 = arith.constant 0 : index
    %c0_12 = arith.constant 0 : index
    %28 = vector.load %arg4[%c0_10, %c0_11, %c0_12] : memref<1x8x128xf32, #tpu.memory_space<vmem>>, vector<1x8x128xf32>
    tpu.vector_store %arg4[%c0_10, %c0_11, %c0_12], %27 {strides = array<i32>} : memref<1x8x128xf32, #tpu.memory_space<vmem>>, vector<1x8x128xf32>,
    return
  }
  func.func @transform_0(%arg0: i32) -> (i32, i32, i32) {
    %c0_i32 = arith.constant 0 : i32
    %c0_i32_0 = arith.constant 0 : i32
    %c0_i32_1 = arith.constant 0 : i32
    return %arg0, %c0_i32, %c0_i32_0 : i32, i32, i32
  }
  func.func @transform_1(%arg0: i32) -> (i32, i32) {
    %c0_i32 = arith.constant 0 : i32
    %c0_i32_0 = arith.constant 0 : i32
    %c0_i32_1 = arith.constant 0 : i32
    return %c0_i32, %c0_i32_0 : i32, i32
  }
  func.func @transform_2(%arg0: i32) -> (i32, i32) {
    %c0_i32 = arith.constant 0 : i32
    %c0_i32_0 = arith.constant 0 : i32
    %c0_i32_1 = arith.constant 0 : i32
    return %c0_i32, %c0_i32_0 : i32, i32
  }
  func.func @transform_3(%arg0: i32) -> (i32, i32, i32) {
    %c0_i32 = arith.constant 0 : i32
    %c0_i32_0 = arith.constant 0 : i32
    %c0_i32_1 = arith.constant 0 : i32
    return %arg0, %c0_i32, %c0_i32_0 : i32, i32, i32
  }
}

</mosaic_0001>

<bundles_post_ra>
// kernel: tpu_custom_call.1
= control target key start
LH: loop header
LB: loop body
LE: loop exit
PB: predicated region body
PF: predicated region fallthrough
CT: control target
= control target key end

     0   :  { %8 = vsyncpa [#allocation3], 0  ;;  %s926_s0 = inlined_call_operand.hbm [shape: f32[2,8,32], index: 0, kind: input, shape index: {}]   ;;  %s927_s1 = inlined_call_operand.hbm [shape: bf16[32,384], index: 1, kind: input, shape index: {}]   ;;  %s928_s2 = inlined_call_operand.hbm [shape: f32[1,384], index: 2, kind: input, shape index: {}]   ;;  %s929_s3 = inlined_call_operand.hbm [shape: f32[2,8,128], index: 3, kind: output, shape index: {}]  }
   0x1   :  { %10 = vsyncpa [#allocation3 + $0x1], 0 }
   0x2   :  { %11 = vsyncpa [#allocation6], 0 }
   0x3   :  { %12 = vsyncpa [#allocation4], 0 }
   0x4   :  { %14 = vsyncpa [#allocation4 + $0x1], 0  ;;  %s777_s12 = smov 0   ;;  %s779_s13 = smov 0  }
   0x5   :  { %s781_s14 = smov 0   ;;  %s783_s15 = smov 0  }
   0x6 LB: > { %s130_s18 = sshll.u32 %s927_s1, 4  ;;  %s801_s19 = sadd.s32 4294967295, %s751_s15   ;;  %s751_s15 = sphi %s783_s15, %s940_s15   ;;  %s747_s14 = sphi %s781_s14, %s939_s14   ;;  %s743_s13 = sphi %s779_s13, %s938_s13   ;;  %s739_s12 = sphi %s777_s12, %s937_s12   ;;  %s131_s18 = int_to_ptr.hbm [resolvable:$true] %s130_s18 }
   0x7   : > { %p469_p0 = scmp.ge.s32.totalorder %s751_s15, 1  ;;  %p41_p1 = scmp.eq.s32.totalorder %s801_s19, 0 }
   0x8   : > { %p119_p2 = scmp.lt.s32.totalorder %s751_s15, 3  ;;  %s753_s21 = smov [#allocation5]  }
   0x9   : > { %s132_s22 = sshll.u32 %s753_s21, 4  ;;  %s145_s25 = sshll.u32 %s928_s2, 4  ;;  %s133_s22 = int_to_ptr.vmem [resolvable:$true] %s132_s22  ;;  %s146_s25 = int_to_ptr.hbm [resolvable:$true] %s145_s25 }
   0xa   : > { %p806_p3 = pnand %p469_p0, %p119_p2  ;;  %s754_s26 = smov [#allocation7]  }
   0xb   : > { %s147_s27 = sshll.u32 %s754_s26, 4  ;;  %s755_s28 = smov 192   ;;  %s148_s27 = int_to_ptr.vmem [resolvable:$true] %s147_s27 }
   0xc   : > { %p530_p4 = pneg %p806_p3  ;;  %s756_s29 = smov 12  }
   0xd   : > { %s468_s30 = sadd.s32 4294967294, %s751_s15   ;;  %s820_s4 = sadd.s32 1, %s751_s15  }
   0xe   : > { %p531_p6 = pnand %p530_p4, %p41_p1  ;;  %s24_s5 = ssub.s32 %s751_s15, %s820_s4 }
   0xf   : > { %s27_s6 = sadd.s32 1, %s747_s14  ;;  %p25_p7 = scmp.eq.s32.totalorder %s24_s5, 0 }
  0x10   : > { %533 = dma.hbm_to_vmem [thread:$0]  (!%p531_p6), %s131_s18, 768, %s133_s22, [#allocation6], %s755_s28, %s755_s28, %s756_s29  }
  0x11   : > { %536 = dma.hbm_to_vmem [thread:$0]  (!%p531_p6), %s146_s25, 48, %s148_s27, [#allocation6]  }
  0x12   : > { %p34_p8 = scmp.ne.s32.totalorder %s747_s14, %s743_s13  ;;  %p35_p9 = scmp.eq.s32.totalorder %s751_s15, 0 }
  0x13   : > { %p40_p10 = scmp.ne.s32.totalorder %s743_s13, %s739_s12  ;;  %p106_p13 = scmp.eq.s32.totalorder %s801_s19, 1 }
  0x14   : > { %s831_s7 = scalar_select %p25_p7, %s747_s14, %s27_s6  }
  0x15   : > { %p833_p11 = por %p35_p9, %p34_p8  ;;  %p839_p12 = por %p41_p1, %p40_p10 }
  0x16   : > { %p112_p0 = scmp.eq.s32.totalorder %s468_s30, 1  ;;  %p547_p2 = scmp.lt.s32.totalorder %s751_s15, 2 }
  0x17   : > { %s158_s10 = sand.u32 1, %s747_s14   ;;  %p846_p4 = por %p106_p13, %p34_p8 }
  0x18   : > { %p850_p6 = por %p112_p0, %p40_p10  ;;  %s473_s17 = sshll.u32 %s158_s10, 3 }
  0x19   : > { %s474_s18 = sshll.u32 %s751_s15, 3  ;;  %s162_s24 = scalar_lea.vmem [#allocation2], %s473_s17 }
  0x1a   : > { %s166_s23 = scalar_lea.hbm %s926_s0, %s474_s18  ;;  %s170_s25 = sshll.u32 %s162_s24, 4  ;;  %s171_s25 = int_to_ptr.vmem [resolvable:$true] %s170_s25 }
  0x1b   : > { %s168_s26 = sshll.u32 %s166_s23, 4  ;;  %p860_p7 = pnand %p547_p2, %p833_p11  ;;  %s169_s26 = int_to_ptr.hbm [resolvable:$true] %s168_s26 }
  0x1c   : > { %s159_s28 = scalar_lea.sflag [#allocation3], %s158_s10  ;;  %s651_s29 = sshra.s32 %s169_s26, 4  ;;  %s652_s29 = int_to_ptr.hbm [resolvable:$true] %s651_s29 }
  0x1d   : > { %s653_s30 = scalar_lea.hbm %s652_s29, 8  ;;  %p655_p9 = pneg %p860_p7 }
  0x1e   : > { %p654_p8 = scmp.ne.s32.totalorder %s652_s29, %s653_s30  ;;  %s658_s17 = scalar_lea.hbm %s926_s0, 16 }
  0x1f   : > { %p659_p11 = scmp.lt.s32.totalorder %s652_s29, %s926_s0  ;;  %p660_p0 = scmp.lt.s32.totalorder %s658_s17, %s653_s30 }
  0x20   : > { %p656_p10 = pnand %p655_p9, %p654_p8 }
  0x21   : > { %p661_p2 = por %p660_p0, %p659_p11 }
  0x22   : > { %p657_p13 = pneg %p656_p10 }
  0x24   : > { %p662_p5 = pnand %p661_p2, %p657_p13 }
  0x26   : > { %665 = shalt.err (!%p662_p5)
}
  0x27   : > { %540 = dma.hbm_to_vmem [thread:$0]  (!%p860_p7), %s169_s26, 128, %s171_s25, %s159_s28  }
  0x28   : > { %179 = sbr.rel (%p806_p3) target bundleno = 592 (0x250), region = 32  ;;  %s877_s10 = sand.u32 (!%p806_p3), 1, %s743_s13  }
  0x29   : > { %s476_s21 = sshll.u32 (!%p806_p3), %s877_s10, 3  ;;  %s182_s22 = scalar_lea.sflag (!%p806_p3), [#allocation3], %s877_s10 }
  0x2a   : > { %s185_s23 = scalar_lea.vmem (!%p806_p3), [#allocation2], %s476_s21 }
  0x2d   : > { %726 = dma.done.wait (%p839_p12), %s182_s22, 128  }
  0x2e   : > { %728 = vsyncadd (%p839_p12), %s182_s22, 4294967168 }
  0x2f   : > { %730 = dma.done.wait (%p41_p1), [#allocation6], 816  }
  0x30   : > { %732 = vsyncadd (%p41_p1), [#allocation6], 4294966480  ;;  %v494_v0 = vld [vmem:[#allocation5 + $0x18] sm:$0xf]  ;;  %v516_v1 = vld [vmem:[#allocation5 + $0x20] sm:$0xf0] }
  0x31   : > { %v515_v2 = vld [vmem:[#allocation5 + $0x1c] sm:$0xf]  ;;  %v495_v3 = vor.u32 %v516_v1, %v494_v0  ;;  %v496_v4 = vld [vmem:[#allocation5 + $0x24] sm:$0xf0]  ;;  %v482_v5 = vld [vmem:[#allocation5] sm:$0xf] }
  0x32   : > { %v513_v6 = vld [vmem:[#allocation5 + $0x8] sm:$0xf0]  ;;  %v499_v7 = vor.u32 %v515_v2, %v496_v4  ;;  %v512_v8 = vld [vmem:[#allocation5 + $0x4] sm:$0xf]  ;;  %v484_v9 = vld [vmem:[#allocation5 + $0xc] sm:$0xf0] }
  0x33   : > { %280 = vmatpush.bf16.msra.mxu0 %v495_v3  ;;  %v483_v10 = vor.u32 %v513_v6, %v482_v5  ;;  %v220_v11 = vld [vmem:[%s185_s23] sm:$0xff]  ;;  %v487_v12 = vor.u32 %v512_v8, %v484_v9  ;;  %vm270_vm0 = vcmask 261120   ;;  %v502_v14 = vld [vmem:[#allocation5 + $0x20] sm:$0xf]  ;;  %v517_v15 = vld [vmem:[#allocation5 + $0x28] sm:$0xf0] }
  0x34   : > { %293 = vmatpush.bf16.msra.mxu1 %v499_v7  ;;  %v221_v13 = vpack.c.bf16 %v220_v11, %v220_v11  ;;  %v490_v16 = vld [vmem:[#allocation5 + $0x8] sm:$0xf]  ;;  %v503_v17 = vor.u32 %v517_v15, %v502_v14  ;;  %v514_v18 = vld [vmem:[#allocation5 + $0x10] sm:$0xf0]  ;;  %v230_v20 = vld [vmem:[#allocation7] sm:$0x7] }
  0x35   : > { %v491_v19 = vor.u32 %v514_v18, %v490_v16  ;;  %v233_v21 = vperm.slane %v230_v20, 1  ;;  %v232_v23 = vperm.slane %v230_v20, 0  ;;  %v234_v31 = vperm.slane %v230_v20, 2  ;;  %s509_s20 = sshll.u32 %s801_s19, 3  ;;  %s218_s26 = scalar_lea.vmem [#allocation8], %s476_s21 }
  0x36   : > { %306 = vmatpush.bf16.msra.mxu2 %v503_v17  ;;  %vm343_vm1 = vcmask 1043456   ;;  %vm329_vm2 = vcmask 64512   ;;  %s374_s25 = scalar_lea.hbm %s929_s3, %s509_s20  ;;  %s376_s27 = sshll.u32 %s218_s26, 4  ;;  %s377_s27 = int_to_ptr.vmem [resolvable:$true] %s376_s27 }
  0x37   : > { %281 = vmatpush.bf16.msra.mxu0 %v483_v10  ;;  %s378_s28 = sshll.u32 %s374_s25, 4  ;;  %s364_s29 = scalar_lea.sflag [#allocation4], %s877_s10  ;;  %s379_s28 = int_to_ptr.hbm [resolvable:$true] %s378_s28 }
  0x38   : > { %294 = vmatpush.bf16.msra.mxu1 %v487_v12  ;;  %s695_s30 = sshra.s32 %s379_s28, 4  ;;  %s701_s17 = scalar_lea.hbm %s929_s3, 16  ;;  %s696_s30 = int_to_ptr.hbm [resolvable:$true] %s695_s30 }
  0x39   : > { %s697_s19 = scalar_lea.hbm %s696_s30, 8  ;;  %p702_p12 = scmp.lt.s32.totalorder %s696_s30, %s929_s3 }
  0x3a   : > { %504 = vmatmul.msk.bf16.vlgmr.msra.gmra.mxu0 %vm270_vm0, %v221_v13  ;;  %307 = vmatpush.bf16.msra.mxu2 %v491_v19  ;;  %p698_p1 = scmp.ne.s32.totalorder %s696_s30, %s697_s19  ;;  %p703_p7 = scmp.lt.s32.totalorder %s701_s17, %s697_s19 }
  0x3b   : > { %505 = vmatmul.msk.bf16.vlgmr.msra.gmra.mxu1 %vm270_vm0, %v221_v13 }
  0x3c   : > { %p699_p3 = pnand %p698_p1, %p846_p4  ;;  %p704_p8 = por %p703_p7, %p702_p12 }
  0x3d   : > { %506 = vmatmul.msk.bf16.vlgmr.msra.gmra.mxu2 %vm270_vm0, %v221_v13 }
  0x3e   : > { %p700_p5 = pneg %p699_p3 }
  0x40   : > { %p705_p9 = pnand %p704_p8, %p700_p5 }
  0xb7   : > { %v283_v22 = vpop.f32.mrf.mxu0 }
  0xb8   : > { %v296_v24 = vpop.f32.mrf.mxu1  ;;  %v284_v27 = vadd.f32 %v283_v22, %v232_v23 }
  0xb9   : > { %v297_v25 = vadd.f32 %v296_v24, %v233_v21 }
  0xba   : > { %v313_v29 = vpack.c.bf16 %v284_v27, %v284_v27 }
  0xbb   : > { %v314_v26 = vpack.c.bf16 %v297_v25, %v297_v25 }
  0xbd   : > { %323 = vmatpush.bf16.xpose.msra.mxu3 %v314_v26 }
  0xbf   : > { %v285_v28 = vpop.f32.mrf.mxu0 }
  0xc0   : > { %v298_v30 = vpop.f32.mrf.mxu1  ;;  %v309_v32 = vpop.f32.mrf.mxu2 }
  0xc1   : > { %v310_v33 = vadd.f32 %v309_v32, %v234_v31 }
  0xc3   : > { %v315_v34 = vpack.c.bf16 %v310_v33, %v310_v33 }
  0xc4   : > { %324 = vmatmul.bf16.vlgmr.msra.gmra.mxu3 %v313_v29 }
  0xc5   : > { %v345_v35 = vsel %vm343_vm1, %v315_v34, 0 }
  0xc6   : > { %354 = vmatpush.bf16.msrb.mxu0 %v345_v35 }
  0xc8   : > { %v311_v36 = vpop.f32.mrf.mxu2 }
 0x147   : > { %v325_v37 = vpop.f32.mrf.mxu3 }
 0x148   : > { %v330_v38 = vsel %vm329_vm2, %v325_v37, -inf }
 0x149   : > { %331 = vmax.xlane.f32.xlu0 %v330_v38 }
 0x14f   : > { %v327_v39 = vpop.f32.mrf.mxu3 }
 0x1bc   : > { %v332_v40 = vpop.xlane.xlu0 %331 }
 0x1bd   : > { %v333_v41 = vsub.f32 %v325_v37, %v332_v40 }
 0x1bf   : > { %v334_v42 = vmul.f32 1.442695, %v333_v41 }
 0x1c1   : > { %587 = vpow2.f32 %v334_v42 }
 0x1c7   : > { %v588_v43 = vpop.eup %587 }
 0x1c8   : > { %v336_v44 = vsel %vm329_vm2, %v588_v43, 0.0  ;;  %v339_v45 = vpack.c.bf16 %v588_v43, %v588_v43 }
 0x1c9   : > { %337 = vadd.xlane.f32.xlu0 %v336_v44 }
 0x1ca   : > { %507 = vmatmul.msk.bf16.vlgmr.msrb.gmra.mxu0 %vm329_vm2, %v339_v45 }
 0x23c   : > { %v338_v46 = vpop.xlane.xlu0 %337 }
 0x23d   : > { %589 = vrcp.f32 %v338_v46 }
 0x243   : > { %v590_v47 = vpop.eup %589 }
 0x247   : > { %v356_v48 = vpop.f32.mrf.mxu0 }
 0x248   : > { %v361_v49 = vmul.f32 %v590_v47, %v356_v48 }
 0x24a   : > { %362 = vst [vmem:[%s218_s26] sm:$0xff] %v361_v49 }
 0x24b   : > { %708 = shalt.err (!%p705_p9)
}
 0x24c   : > { %528 = dma.vmem_to_hbm [thread:$0]  (%p846_p4), %s377_s27, 128, %s379_s28, %s364_s29  }
 0x24f   : > { %v358_v50 = vpop.f32.mrf.mxu0 }
 0x250 PF: > { %s390_s10 = sand.u32 1, %s739_s12   ;;  %p936_p10 = scmp.ge.s32.totalorder %s751_s15, 2 }
 0x251   : > { %s391_s21 = scalar_lea.sflag [#allocation4], %s390_s10 }
 0x252   : > { %p542_p13 = pnand %p936_p10, %p850_p6 }
 0x254   : > { %p543_p11 = pneg %p542_p13 }
 0x256   : > { %734 = dma.done.wait (%p543_p11), %s391_s21, 128  }
 0x257   : > { %736 = vsyncadd (%p543_p11), %s391_s21, 4294967168  ;;  %p17_p0 = scmp.ge.s32.totalorder %s820_s4, 4   ;;  %s937_s12 = smov %s743_s13 }
 0x258   : > { %s938_s13 = smov %s747_s14  ;;  %s939_s14 = smov %s831_s7 }
 0x259   : > { %s940_s15 = smov %s820_s4  ;;  %19 = sbr.rel (!%p17_p0) target bundleno = 6 (0x6), region = 85 }
 0x25e   :  { %397 = vsyncpa [#allocation3], 1 }
 0x25f   :  { %399 = vsyncpa [#allocation3 + $0x1], 1 }
 0x260   :  { %400 = vsyncpa [#allocation6], 1 }
 0x261   :  { %401 = vsyncpa [#allocation4], 1 }
 0x262   :  { %403 = vsyncpa [#allocation4 + $0x1], 1 }

</bundles_post_ra>
